<compile_context>
chip_gen: v5e
topology: v5e:2x2
jax: 0.10.0
libtpu: 0.0.40
codegen_flags: <defaults>
</compile_context>

<pallas_src>
import functools

import jax
import jax.numpy as jnp
from jax import lax
from jax.experimental import pallas as pl
from jax.experimental.pallas import tpu as pltpu


def _round_up(n, m):
    return ((n + m - 1) // m) * m


def _vmem_capacity_bytes():
    """Physical per-core VMEM (v5e/v6e: 128 MiB, v7x: 64 MiB); safe fallback."""
    try:
        info = pltpu.get_tpu_info()
        cap = getattr(info, "vmem_capacity_bytes", None)
        if cap:
            return int(cap)
    except Exception:
        pass
    return 64 * 1024 * 1024


def _mlp_kernel(x_ref, w1_ref, b1_ref, w2_ref, b2_ref, w3_ref, b3_ref,
                o_ref, acc_ref, *, valid_last_k):
    """Grid = (batch tiles, K tiles over input_dim).

    Layer-1 partial products are accumulated into a (bb, 128) f32 scratch;
    layers 2/3 run only on the last K step.  `valid_last_k` (static Python int)
    is the number of in-bounds feature columns in the final K tile; when it is
    smaller than the tile width the ragged tail is masked in-kernel (x is NOT
    padded in HBM).
    """
    k = pl.program_id(1)
    nk = pl.num_programs(1)

    @pl.when(k == 0)
    def _init():
        # Seed the accumulator with the broadcast bias: the bias add is free and
        # no broadcast is re-issued inside the K loop.
        acc_ref[...] = jnp.broadcast_to(
            b1_ref[...].astype(jnp.float32), acc_ref.shape)

    tk = x_ref.shape[1]
    ragged = valid_last_k < tk          # static

    if ragged:
        @pl.when(k < nk - 1)
        def _full_step():
            acc_ref[...] += jnp.dot(x_ref[...], w1_ref[...],
                                    preferred_element_type=jnp.float32)

        @pl.when(k == nk - 1)
        def _last_step():
            # Ragged final K tile: explicitly zero the out-of-bounds columns of
            # x AND rows of w1 (out-of-bounds block contents are unspecified;
            # never rely on 0 * garbage, the garbage could be NaN/Inf).
            xv = x_ref[...]
            wv = w1_ref[...]
            col = lax.broadcasted_iota(jnp.int32, xv.shape, 1)
            row = lax.broadcasted_iota(jnp.int32, wv.shape, 0)
            xv = jnp.where(col < valid_last_k, xv, jnp.zeros_like(xv))
            wv = jnp.where(row < valid_last_k, wv, jnp.zeros_like(wv))
            acc_ref[...] += jnp.dot(xv, wv, preferred_element_type=jnp.float32)
    else:
        acc_ref[...] += jnp.dot(x_ref[...], w1_ref[...],
                                preferred_element_type=jnp.float32)

    @pl.when(k == nk - 1)
    def _finalize():
        h1 = jnp.maximum(acc_ref[...], 0.0)                        # ReLU
        # Layer 2: Linear(128, 64) + ReLU (small MXU matmul).
        h2 = jnp.dot(h1.astype(w2_ref.dtype), w2_ref[...],
                     preferred_element_type=jnp.float32)
        h2 = jnp.maximum(h2 + b2_ref[...].astype(jnp.float32), 0.0)
        # Layer 3: Linear(64, 1).  N=1 -> VPU multiply + XLU lane reduction
        # instead of an MXU matmul with a single useful output column.
        out = jnp.sum(h2 * w3_ref[...].astype(jnp.float32),
                      axis=-1, keepdims=True)
        o_ref[...] = (out + b3_ref[...].astype(jnp.float32)).astype(o_ref.dtype)


@functools.partial(jax.jit, static_argnames=("block_b", "block_k"))
def simple_nn_forward(x, params, block_b=1024, block_k=2048):
    """Forward pass of SimpleNN.

    x      : (B, input_dim) array.
    params : dict with w1 (D,128), b1 (1,128), w2 (128,64), b2 (1,64),
             w3 (64,1), b3 (1,1)  (y = x @ W + b layout, matching PyTorch's
             y = x @ W.T + b with W of shape (out, in)).

    For bf16 layer-1 traffic, pre-cast params["w1"] (and x if it already lives
    in bf16 upstream) ONCE outside this call; accumulation stays f32.
    """
    B, D = x.shape
    out_dtype = x.dtype

    w1, b1 = params["w1"], params["b1"]
    w2, b2 = params["w2"], params["b2"]
    w3, b3 = params["w3"], params["b3"]
    H1, H2 = w1.shape[1], w2.shape[1]
    b1 = jnp.reshape(b1, (1, H1))
    b2 = jnp.reshape(b2, (1, H2))
    w3_row = jnp.reshape(w3, (1, H2))       # (1, 64) row for the VPU epilogue
    b3 = jnp.reshape(b3, (1, 1))

    # ---- batch tile --------------------------------------------------------
    # Big enough to amortise grid-step overhead and the per-tile w1 re-stream
    # (extra w1 traffic = 128/bb of the x traffic), but capped at ~B/2 so the
    # "parallel" batch axis can still shard across both TensorCores on v7x.
    bb = _round_up(min(block_b, B), 8)
    if B > 8:
        bb = min(bb, _round_up(-(-B // 2), 8))
    bb = max(bb, 8)
    n_b = -(-B // bb)

    # ---- K tile over input_dim ---------------------------------------------
    if D <= block_k:
        tk, n_k, valid_last_k = D, 1, D          # single K step, full feature dim
    else:
        tk = _round_up(block_k, 128)             # lane axis of x
        n_k = -(-D // tk)
        valid_last_k = D - (n_k - 1) * tk        # in-bounds cols of the last tile

    # ---- explicit VMEM budget (honest accounting + fixed Mosaic margin) -----
    x_isz = jnp.dtype(x.dtype).itemsize
    w1_isz = jnp.dtype(w1.dtype).itemsize
    out_isz = jnp.dtype(out_dtype).itemsize
    vmem_bytes = (
        2 * bb * tk * x_isz                       # x tile (double-buffered)
        + 2 * tk * H1 * w1_isz                    # w1 tile (double-buffered)
        + bb * H1 * 4                             # f32 layer-1 accumulator
        + 2 * bb * 128 * out_isz                  # output tile (lane-padded)
        + 2 * 4 * (8 * 128 + H1 * 128 + 3 * 8 * 128)   # small weights / biases
    )
    cap = (_vmem_capacity_bytes() * 3) // 4       # ~48 MiB v7x, ~96 MiB v5e/v6e
    vmem_limit = int(min(max(vmem_bytes + (4 << 20), 16 << 20), cap))

    kernel = functools.partial(_mlp_kernel, valid_last_k=valid_last_k)

    out = pl.pallas_call(
        kernel,
        out_shape=jax.ShapeDtypeStruct((B, 1), out_dtype),
        grid_spec=pltpu.PrefetchScalarGridSpec(
            num_scalar_prefetch=0,
            grid=(n_b, n_k),
            in_specs=[
                pl.BlockSpec((bb, tk), lambda i, k: (i, k)),     # x
                pl.BlockSpec((tk, H1), lambda i, k: (k, 0)),     # w1
                pl.BlockSpec((1, H1), lambda i, k: (0, 0)),      # b1
                pl.BlockSpec((H1, H2), lambda i, k: (0, 0)),     # w2
                pl.BlockSpec((1, H2), lambda i, k: (0, 0)),      # b2
                pl.BlockSpec((1, H2), lambda i, k: (0, 0)),      # w3 row
                pl.BlockSpec((1, 1), lambda i, k: (0, 0)),       # b3
            ],
            out_specs=pl.BlockSpec((bb, 1), lambda i, k: (i, 0)),
            scratch_shapes=[pltpu.VMEM((bb, H1), jnp.float32)],
        ),
        compiler_params=pltpu.CompilerParams(
            dimension_semantics=("parallel", "arbitrary"),
            vmem_limit_bytes=vmem_limit,
        ),
    )(x, w1, b1, w2, b2, w3_row, b3)

    return out


def init_params(key, input_dim):
    """Deterministic init, PyTorch-Linear-style uniform(-1/sqrt(fan_in), +)."""
    ks = jax.random.split(key, 6)

    def linear(kw, kb, fan_in, fan_out):
        bound = 1.0 / jnp.sqrt(jnp.float32(fan_in))
        w = jax.random.uniform(kw, (fan_in, fan_out), jnp.float32, -bound, bound)
        b = jax.random.uniform(kb, (1, fan_out), jnp.float32, -bound, bound)
        return w, b

    w1, b1 = linear(ks[0], ks[1], input_dim, 128)
    w2, b2 = linear(ks[2], ks[3], 128, 64)
    w3, b3 = linear(ks[4], ks[5], 64, 1)
    return {"w1": w1, "b1": b1, "w2": w2, "b2": b2, "w3": w3, "b3": b3}


def reference_forward(x, p):
    hi = jax.lax.Precision.HIGHEST
    h1 = jnp.maximum(jnp.dot(x, p["w1"], precision=hi) + p["b1"], 0.0)
    h2 = jnp.maximum(jnp.dot(h1, p["w2"], precision=hi) + p["b2"], 0.0)
    return jnp.dot(h2, p["w3"], precision=hi) + p["b3"]


# TODO(synk): StandardScaler preprocessing and the training loop from the source
# file are out of scope here; only the SimpleNN forward pass is implemented.

if __name__ == "__main__":
    key = jax.random.PRNGKey(0)
    k_x, k_p = jax.random.split(key)

    # Small shapes chosen to exercise all un-padded edge paths:
    #   batch=20   -> bb=16, 2 batch tiles, ragged 4-row tail (OOB rows dropped)
    #   input_dim=300, block_k=256 -> 2 K tiles, ragged 44-column tail masked
    batch, input_dim = 20, 300
    x = jax.random.normal(k_x, (batch, input_dim), jnp.float32)
    params = init_params(k_p, input_dim)

    # K-tiled + ragged-masking path.
    out = simple_nn_forward(x, params, block_b=1024, block_k=256)
    out = jax.block_until_ready(out)

    # Default (single-K-step, full feature dim) path.
    out_single = simple_nn_forward(x, params)
    out_single = jax.block_until_ready(out_single)

    ref = reference_forward(x, params)
    assert out.shape == (batch, 1), out.shape
    assert out_single.shape == (batch, 1), out_single.shape
    err_tiled = float(jnp.max(jnp.abs(out - ref)))
    err_single = float(jnp.max(jnp.abs(out_single - ref)))
    assert jnp.allclose(out, ref, atol=2e-3, rtol=2e-3), (
        f"K-tiled path mismatch vs reference, max abs err {err_tiled}")
    assert jnp.allclose(out_single, ref, atol=2e-3, rtol=2e-3), (
        f"single-step path mismatch vs reference, max abs err {err_single}")

    print("KERNEL_OK")
</pallas_src>

<mosaic_0001>
module attributes {stable_mosaic.version = 11 : i64} {
  func.func @_mlp_kernel(%arg0: i32, %arg1: i32, %arg2: memref<16x256xf32, #tpu.memory_space<vmem>>, %arg3: memref<256x128xf32, #tpu.memory_space<vmem>>, %arg4: memref<1x128xf32, #tpu.memory_space<vmem>>, %arg5: memref<128x64xf32, #tpu.memory_space<vmem>>, %arg6: memref<1x64xf32, #tpu.memory_space<vmem>>, %arg7: memref<1x64xf32, #tpu.memory_space<vmem>>, %arg8: memref<1x1xf32, #tpu.memory_space<vmem>>, %arg9: memref<16x1xf32, #tpu.memory_space<vmem>>, %arg10: memref<16x128xf32, #tpu.memory_space<vmem>>) attributes {dimension_semantics = [#tpu.dimension_semantics<parallel>, #tpu.dimension_semantics<arbitrary>], iteration_bounds = array<i64: 2, 2>, scalar_prefetch = 0 : i64, scratch_operands = 1 : i64, tpu.core_type = #tpu.core_type<tc>, window_params = [{transform_indices = @transform_0, window_bounds = array<i64: 16, 256>}, {transform_indices = @transform_1, window_bounds = array<i64: 256, 128>}, {pipeline_mode = #tpu.pipeline_mode<synchronous>, transform_indices = @transform_2, window_bounds = array<i64: 1, 128>}, {pipeline_mode = #tpu.pipeline_mode<synchronous>, transform_indices = @transform_3, window_bounds = array<i64: 128, 64>}, {pipeline_mode = #tpu.pipeline_mode<synchronous>, transform_indices = @transform_4, window_bounds = array<i64: 1, 64>}, {pipeline_mode = #tpu.pipeline_mode<synchronous>, transform_indices = @transform_5, window_bounds = array<i64: 1, 64>}, {pipeline_mode = #tpu.pipeline_mode<synchronous>, transform_indices = @transform_6, window_bounds = array<i64: 1, 1>}, {transform_indices = @transform_7, window_bounds = array<i64: 16, 1>}]} {
    %c0_i32 = arith.constant 0 : i32
    %0 = arith.cmpi eq, %arg1, %c0_i32 : i32
    %1 = arith.extui %0 : i1 to i32
    %c0_i32_0 = arith.constant 0 : i32
    %2 = arith.cmpi ne, %1, %c0_i32_0 : i32
    scf.if %2 {
      %c0 = arith.constant 0 : index
      %c0_6 = arith.constant 0 : index
      %12 = vector.load %arg4[%c0, %c0_6] : memref<1x128xf32, #tpu.memory_space<vmem>>, vector<1x128xf32>
      %13 = vector.shape_cast %12 : vector<1x128xf32> to vector<1x128xf32>
      %14 = vector.broadcast %13 : vector<1x128xf32> to vector<16x128xf32>
      %c0_7 = arith.constant 0 : index
      %c0_8 = arith.constant 0 : index
      %15 = vector.load %arg10[%c0_7, %c0_8] : memref<16x128xf32, #tpu.memory_space<vmem>>, vector<16x128xf32>
      tpu.vector_store %arg10[%c0_7, %c0_8], %14 {strides = array<i32>} : memref<16x128xf32, #tpu.memory_space<vmem>>, vector<16x128xf32>,
    } else {
    }
    %c1_i32 = arith.constant 1 : i32
    %3 = arith.cmpi slt, %arg1, %c1_i32 : i32
    %4 = arith.extui %3 : i1 to i32
    %c0_i32_1 = arith.constant 0 : i32
    %5 = arith.cmpi ne, %4, %c0_i32_1 : i32
    scf.if %5 {
      %c0 = arith.constant 0 : index
      %c0_6 = arith.constant 0 : index
      %12 = vector.load %arg10[%c0, %c0_6] : memref<16x128xf32, #tpu.memory_space<vmem>>, vector<16x128xf32>
      %c0_7 = arith.constant 0 : index
      %c0_8 = arith.constant 0 : index
      %13 = vector.load %arg2[%c0_7, %c0_8] : memref<16x256xf32, #tpu.memory_space<vmem>>, vector<16x256xf32>
      %c0_9 = arith.constant 0 : index
      %c0_10 = arith.constant 0 : index
      %14 = vector.load %arg3[%c0_9, %c0_10] : memref<256x128xf32, #tpu.memory_space<vmem>>, vector<256x128xf32>
      %cst = arith.constant dense<0.000000e+00> : vector<16x128xf32>
      %15 = tpu.matmul %13, %14, %cst {dimension_numbers = #tpu.dot_dimension_numbers<[1], [0], [0], [1], [0, 0, 1, 1], [], []>} : vector<16x256xf32>, vector<256x128xf32>, vector<16x128xf32> -> vector<16x128xf32>
      %16 = arith.addf %12, %15 : vector<16x128xf32>
      %c0_11 = arith.constant 0 : index
      %c0_12 = arith.constant 0 : index
      %17 = vector.load %arg10[%c0_11, %c0_12] : memref<16x128xf32, #tpu.memory_space<vmem>>, vector<16x128xf32>
      tpu.vector_store %arg10[%c0_11, %c0_12], %16 {strides = array<i32>} : memref<16x128xf32, #tpu.memory_space<vmem>>, vector<16x128xf32>,
    } else {
    }
    %c1_i32_2 = arith.constant 1 : i32
    %6 = arith.cmpi eq, %arg1, %c1_i32_2 : i32
    %7 = arith.extui %6 : i1 to i32
    %c0_i32_3 = arith.constant 0 : i32
    %8 = arith.cmpi ne, %7, %c0_i32_3 : i32
    scf.if %8 {
      %c0 = arith.constant 0 : index
      %c0_6 = arith.constant 0 : index
      %12 = vector.load %arg2[%c0, %c0_6] : memref<16x256xf32, #tpu.memory_space<vmem>>, vector<16x256xf32>
      %c0_7 = arith.constant 0 : index
      %c0_8 = arith.constant 0 : index
      %13 = vector.load %arg3[%c0_7, %c0_8] : memref<256x128xf32, #tpu.memory_space<vmem>>, vector<256x128xf32>
      %14 = tpu.iota {dimensions = array<i32: 1>} : vector<16x256xi32>
      %15 = tpu.iota {dimensions = array<i32: 0>} : vector<256x128xi32>
      %c44_i32 = arith.constant 44 : i32
      %16 = vector.broadcast %c44_i32 : i32 to vector<16x256xi32>
      %17 = arith.cmpi slt, %14, %16 : vector<16x256xi32>
      %cst = arith.constant 0.000000e+00 : f32
      %18 = vector.broadcast %cst : f32 to vector<16x256xf32>
      %19 = arith.select %17, %12, %18 : vector<16x256xi1>, vector<16x256xf32>
      %c44_i32_9 = arith.constant 44 : i32
      %20 = vector.broadcast %c44_i32_9 : i32 to vector<256x128xi32>
      %21 = arith.cmpi slt, %15, %20 : vector<256x128xi32>
      %cst_10 = arith.constant 0.000000e+00 : f32
      %22 = vector.broadcast %cst_10 : f32 to vector<256x128xf32>
      %23 = arith.select %21, %13, %22 : vector<256x128xi1>, vector<256x128xf32>
      %c0_11 = arith.constant 0 : index
      %c0_12 = arith.constant 0 : index
      %24 = vector.load %arg10[%c0_11, %c0_12] : memref<16x128xf32, #tpu.memory_space<vmem>>, vector<16x128xf32>
      %cst_13 = arith.constant dense<0.000000e+00> : vector<16x128xf32>
      %25 = tpu.matmul %19, %23, %cst_13 {dimension_numbers = #tpu.dot_dimension_numbers<[1], [0], [0], [1], [0, 0, 1, 1], [], []>} : vector<16x256xf32>, vector<256x128xf32>, vector<16x128xf32> -> vector<16x128xf32>
      %26 = arith.addf %24, %25 : vector<16x128xf32>
      %c0_14 = arith.constant 0 : index
      %c0_15 = arith.constant 0 : index
      %27 = vector.load %arg10[%c0_14, %c0_15] : memref<16x128xf32, #tpu.memory_space<vmem>>, vector<16x128xf32>
      tpu.vector_store %arg10[%c0_14, %c0_15], %26 {strides = array<i32>} : memref<16x128xf32, #tpu.memory_space<vmem>>, vector<16x128xf32>,
    } else {
    }
    %c1_i32_4 = arith.constant 1 : i32
    %9 = arith.cmpi eq, %arg1, %c1_i32_4 : i32
    %10 = arith.extui %9 : i1 to i32
    %c0_i32_5 = arith.constant 0 : i32
    %11 = arith.cmpi ne, %10, %c0_i32_5 : i32
    scf.if %11 {
      %c0 = arith.constant 0 : index
      %c0_6 = arith.constant 0 : index
      %12 = vector.load %arg10[%c0, %c0_6] : memref<16x128xf32, #tpu.memory_space<vmem>>, vector<16x128xf32>
      %cst = arith.constant 0.000000e+00 : f32
      %13 = vector.broadcast %cst : f32 to vector<16x128xf32>
      %14 = arith.maximumf %12, %13 : vector<16x128xf32>
      %c0_7 = arith.constant 0 : index
      %c0_8 = arith.constant 0 : index
      %15 = vector.load %arg5[%c0_7, %c0_8] : memref<128x64xf32, #tpu.memory_space<vmem>>, vector<128x64xf32>
      %cst_9 = arith.constant dense<0.000000e+00> : vector<16x64xf32>
      %16 = tpu.matmul %14, %15, %cst_9 {dimension_numbers = #tpu.dot_dimension_numbers<[1], [0], [0], [1], [0, 0, 1, 1], [], []>} : vector<16x128xf32>, vector<128x64xf32>, vector<16x64xf32> -> vector<16x64xf32>
      %c0_10 = arith.constant 0 : index
      %c0_11 = arith.constant 0 : index
      %17 = vector.load %arg6[%c0_10, %c0_11] : memref<1x64xf32, #tpu.memory_space<vmem>>, vector<1x64xf32>
      %18 = vector.broadcast %17 : vector<1x64xf32> to vector<16x64xf32>
      %19 = arith.addf %16, %18 : vector<16x64xf32>
      %cst_12 = arith.constant 0.000000e+00 : f32
      %20 = vector.broadcast %cst_12 : f32 to vector<16x64xf32>
      %21 = arith.maximumf %19, %20 : vector<16x64xf32>
      %c0_13 = arith.constant 0 : index
      %c0_14 = arith.constant 0 : index
      %22 = vector.load %arg7[%c0_13, %c0_14] : memref<1x64xf32, #tpu.memory_space<vmem>>, vector<1x64xf32>
      %23 = vector.broadcast %22 : vector<1x64xf32> to vector<16x64xf32>
      %24 = arith.mulf %21, %23 : vector<16x64xf32>
      %cst_15 = arith.constant dense<0.000000e+00> : vector<16xf32>
      %25 = vector.multi_reduction <add>, %24, %cst_15 [1] : vector<16x64xf32> to vector<16xf32>
      %26 = vector.shape_cast %25 : vector<16xf32> to vector<16x1xf32>
      %c0_16 = arith.constant 0 : index
      %c0_17 = arith.constant 0 : index
      %27 = vector.load %arg8[%c0_16, %c0_17] : memref<1x1xf32, #tpu.memory_space<vmem>>, vector<1x1xf32>
      %28 = vector.broadcast %27 : vector<1x1xf32> to vector<16x1xf32>
      %29 = arith.addf %26, %28 : vector<16x1xf32>
      %c0_18 = arith.constant 0 : index
      %c0_19 = arith.constant 0 : index
      %30 = vector.load %arg9[%c0_18, %c0_19] : memref<16x1xf32, #tpu.memory_space<vmem>>, vector<16x1xf32>
      tpu.vector_store %arg9[%c0_18, %c0_19], %29 {strides = array<i32>} : memref<16x1xf32, #tpu.memory_space<vmem>>, vector<16x1xf32>,
    } else {
    }
    return
  }
  func.func @transform_0(%arg0: i32, %arg1: i32) -> (i32, i32) {
    %c0_i32 = arith.constant 0 : i32
    return %arg0, %arg1 : i32, i32
  }
  func.func @transform_1(%arg0: i32, %arg1: i32) -> (i32, i32) {
    %c0_i32 = arith.constant 0 : i32
    %c0_i32_0 = arith.constant 0 : i32
    return %arg1, %c0_i32 : i32, i32
  }
  func.func @transform_2(%arg0: i32, %arg1: i32) -> (i32, i32) {
    %c0_i32 = arith.constant 0 : i32
    %c0_i32_0 = arith.constant 0 : i32
    %c0_i32_1 = arith.constant 0 : i32
    return %c0_i32, %c0_i32_0 : i32, i32
  }
  func.func @transform_3(%arg0: i32, %arg1: i32) -> (i32, i32) {
    %c0_i32 = arith.constant 0 : i32
    %c0_i32_0 = arith.constant 0 : i32
    %c0_i32_1 = arith.constant 0 : i32
    return %c0_i32, %c0_i32_0 : i32, i32
  }
  func.func @transform_4(%arg0: i32, %arg1: i32) -> (i32, i32) {
    %c0_i32 = arith.constant 0 : i32
    %c0_i32_0 = arith.constant 0 : i32
    %c0_i32_1 = arith.constant 0 : i32
    return %c0_i32, %c0_i32_0 : i32, i32
  }
  func.func @transform_5(%arg0: i32, %arg1: i32) -> (i32, i32) {
    %c0_i32 = arith.constant 0 : i32
    %c0_i32_0 = arith.constant 0 : i32
    %c0_i32_1 = arith.constant 0 : i32
    return %c0_i32, %c0_i32_0 : i32, i32
  }
  func.func @transform_6(%arg0: i32, %arg1: i32) -> (i32, i32) {
    %c0_i32 = arith.constant 0 : i32
    %c0_i32_0 = arith.constant 0 : i32
    %c0_i32_1 = arith.constant 0 : i32
    return %c0_i32, %c0_i32_0 : i32, i32
  }
  func.func @transform_7(%arg0: i32, %arg1: i32) -> (i32, i32) {
    %c0_i32 = arith.constant 0 : i32
    %c0_i32_0 = arith.constant 0 : i32
    return %arg0, %c0_i32 : i32, i32
  }
}

</mosaic_0001>

<bundles_post_ra>
// kernel: simple_nn_forward.1
= control target key start
LH: loop header
LB: loop body
LE: loop exit
PB: predicated region body
PF: predicated region fallthrough
CT: control target
= control target key end

     0   :  { %s3535_s0 = inlined_call_operand.vmem [shape: f32[20,300], index: 0, kind: input, shape index: {}]   ;;  %s3536_s1 = inlined_call_operand.hbm [shape: f32[300,128], index: 1, kind: input, shape index: {}]   ;;  %s3537_s2 = inlined_call_operand.vmem [shape: f32[1,128], index: 2, kind: input, shape index: {}]   ;;  %s3538_s3 = inlined_call_operand.vmem [shape: f32[128,64], index: 3, kind: input, shape index: {}]   ;;  %s3539_s4 = inlined_call_operand.vmem [shape: f32[1,64], index: 4, kind: input, shape index: {}]   ;;  %s3540_s5 = inlined_call_operand.vmem [shape: f32[1,64], index: 5, kind: input, shape index: {}]   ;;  %s3541_s6 = inlined_call_operand.<no memory space> [shape: f32[1,1], index: 6, kind: input, shape index: {}]   ;;  %s3542_s7 = inlined_call_operand.vmem [shape: f32[20,1], index: 7, kind: output, shape index: {}]  }
   0x1   :  { %3556 = sst [smem:[#allocation24_spill]] %s3535_s0  ;;  %v12_v0 = vstv %s3541_s6 }
   0x2   :  { %3557 = sst [smem:[#allocation25_spill]] %s3537_s2  ;;  %13 = vst [vmem:[#allocation3] sm:$0x1] %v12_v0 }
   0x3   :  { %3558 = sst [smem:[#allocation26_spill]] %s3538_s3 }
   0x4   :  { %3559 = sst [smem:[#allocation27_spill]] %s3539_s4 }
   0x5   :  { %3560 = sst [smem:[#allocation28_spill]] %s3540_s5 }
   0x6   :  { %3561 = sst [smem:[#allocation29_spill]] %s3542_s7 }
   0x7   :  { %14 = vsyncpa [#allocation6], 0 }
   0x8   :  { %16 = vsyncpa [#allocation6 + $0x1], 0  ;;  %s3000_s26 = smov 0   ;;  %s3002_s27 = smov 0  }
   0x9   :  { %s3004_s28 = smov 0   ;;  %s3006_s29 = smov 0  }
   0xa   :  { %s3008_s30 = smov 0   ;;  %s3010_s8 = smov 0  }
   0xb   :  { %s3012_s9 = smov 0   ;;  %s3014_s10 = smov 0  }
   0xc   :  { %s3016_s6 = smov 0   ;;  %s3018_s11 = smov 0  }
   0xd   :  { %s3020_s12 = smov 0   ;;  %s3022_s13 = smov 0  }
   0xe LB: > { %3562 = sst [smem:[#allocation9_spill]] %s2769_s26  ;;  %s1760_s14 = sadd.s32 4294967295, %s2813_s13   ;;  %s2813_s13 = sphi %s3022_s13, %s22_s13   ;;  %s2809_s12 = sphi %s3020_s12, %s3620_s12   ;;  %s2805_s11 = sphi %s3018_s11, %s3619_s11   ;;  %s2801_s6 = sphi %s3016_s6, %s3613_s6   ;;  %s2797_s10 = sphi %s3014_s10, %s3618_s10   ;;  %s2793_s9 = sphi %s3012_s9, %s3612_s9   ;;  %s2789_s8 = sphi %s3010_s8, %s3611_s8   ;;  %s2785_s30 = sphi %s3008_s30, %s3617_s30   ;;  %s2781_s29 = sphi %s3006_s29, %s3616_s29   ;;  %s2777_s28 = sphi %s3004_s28, %s3609_s28   ;;  %s2773_s27 = sphi %s3002_s27, %s3608_s27   ;;  %s2769_s26 = sphi %s3000_s26, %s3607_s26  }
   0xf   : > { %3563 = sst [smem:[#allocation10_spill]] %s2773_s27  ;;  %s31_s15 = sadd.s32 1, %s2805_s11 }
  0x10   : > { %3564 = sst [smem:[#allocation11_spill]] %s2781_s29  ;;  %p32_p0 = scmp.ge.s32.totalorder %s31_s15, 2 }
  0x11   : > { %3565 = sst [smem:[#allocation12_spill]] %s2789_s8  ;;  %s34_s16 = sadd.s32 1, %s2809_s12 }
  0x12   : > { %3566 = sst [smem:[#allocation13_spill]] %s2793_s9  ;;  %s43_s17 = sadd.s32 1, %s2793_s9 }
  0x13   : > { %3567 = sst [smem:[#allocation14_spill]] %s2797_s10  ;;  %p50_p1 = scmp.ne.s32.totalorder %s2793_s9, %s2789_s8 }
  0x14   : > { %3568 = sst [smem:[#allocation15_spill]] %s2801_s6  ;;  %s3622_s15 = smov (%p32_p0, %s31_s15), 0 }
  0x15   : > { %3569 = sst [smem:[#allocation16_spill]] %s2809_s12  ;;  %s3624_s16 = smov (!%p32_p0, %s34_s16), %s2809_s12 }
  0x16   : > { %3570 = sst [smem:[#allocation17_spill]] %s3622_s15  ;;  %s39_s18 = ssub.s32 %s2805_s11, %s3622_s15 }
  0x17   : > { %p51_p2 = scmp.eq.s32.totalorder %s2813_s13, 0  ;;  %p36_p3 = scmp.ge.s32.totalorder %s3624_s16, 2 }
  0x18   : > { %p67_p4 = scmp.eq.s32.totalorder %s39_s18, 0  ;;  %s69_s20 = sadd.s32 1, %s2785_s30 }
  0x19   : > { %p3072_p5 = por %p51_p2, %p50_p1  ;;  %s3626_s16 = smov (%p36_p3, %s3624_s16), 0 }
  0x1a   : > { %3572 = sst [smem:[#allocation18_spill]] %s3626_s16  ;;  %s38_s22 = ssub.s32 %s2809_s12, %s3626_s16 }
  0x1b   : > { %s3080_s21 = scalar_select %p67_p4, %s2785_s30, %s69_s20  }
  0x1c   : > { %p76_p6 = scmp.ne.s32.totalorder %s2785_s30, %s2781_s29  ;;  %s40_s23 = sor.u32 %s39_s18, %s38_s22 }
  0x1d   : > { %3573 = sst [smem:[#allocation19_spill]] %s3080_s21  ;;  %p82_p7 = scmp.ne.s32.totalorder %s2781_s29, %s2777_s28 }
  0x1e   : > { %p41_p8 = scmp.eq.s32.totalorder %s40_s23, 0  ;;  %p3088_p9 = por %p76_p6, %p51_p2 }
  0x1f   : > { %p83_p10 = scmp.eq.s32.totalorder %s1760_s14, 0  ;;  %p198_p11 = scmp.eq.s32.totalorder %s38_s22, 0 }
  0x20   : > { %s3095_s25 = scalar_select %p41_p8, %s2793_s9, %s43_s17  }
  0x21   : > { %p3097_p12 = por %p83_p10, %p82_p7  ;;  %s200_s20 = sadd.s32 1, %s2773_s27 }
  0x22   : > { %3575 = sst [smem:[#allocation20_spill]] %s3095_s25  ;;  %p210_p13 = scmp.ne.s32.totalorder %s2773_s27, %s2769_s26 }
  0x23   : > { %s3576_s15 = scalar_select %p3097_p12, 1, 0 }
  0x24   : > { %s3103_s21 = scalar_select %p198_p11, %s2773_s27, %s200_s20  }
  0x25   : > { %3577 = sst [smem:[#allocation21_spill]] %s3576_s15  ;;  %p211_p0 = scmp.eq.s32.totalorder %s1760_s14, 3 }
  0x26   : > { %3578 = sst [smem:[#allocation22_spill]] %s3103_s21  ;;  %p1763_p2 = scmp.ge.s32.totalorder %s2813_s13, 4 }
  0x27   : > { %p3109_p1 = por %p211_p0, %p210_p13 }
  0x28   : > { %248 = sbr.rel (%p1763_p2) target bundleno = 217 (0xd9), region = 36 }
  0x29   : > { %s3579_s28 = scalar_select %p3109_p1, 1, 0 }
  0x2b   : > { %3580 = sst [smem:[#allocation23_spill]] %s3579_s28 }
  0x2d   : > { %251 = sbr.rel (!%p3072_p5) target bundleno = 181 (0xb5), region = 40  ;;  %s253_s17 = sand.u32 (%p3072_p5), 1, %s2793_s9  }
  0x2e   : > { %s1765_s18 = sshll.u32 (%p3072_p5), %s2809_s12, 1  ;;  %s1764_s22 = sshll.u32 (%p3072_p5), %s253_s17, 5 }
  0x2f   : > { %s1766_s23 = sshll.u32 (%p3072_p5), %s2805_s11, 1  ;;  %s258_s20 = ssub.s32 (%p3072_p5), 3, %s1765_s18 }
  0x30   : > { %p259_p3 = scmp.lt.s32.totalorder (%p3072_p5), %s258_s20, 2  ;;  %s262_s14 = ssub.s32 (%p3072_p5), 3, %s1766_s23 }
  0x31   : > { %p263_p4 = scmp.lt.s32.totalorder (%p3072_p5), %s262_s14, 2  ;;  %s1921_s16 = smul.u32 (%p3072_p5), 6, %s2809_s12 }
  0x32   : > { %s3628_s20 = smov (!%p259_p3, %s258_s20), 2  ;;  %s3581_s0 = sld [smem:[#allocation24_spill]] }
  0x33   : > { %s3630_s14 = smov (!%p263_p4, %s262_s14), 2  ;;  %s1767_s25 = sshll.u32 %s3628_s20, 3 }
  0x34   : > { %s268_s19 = sadd.s32 %s1921_s16, %s1766_s23  ;;  %s265_s21 = smul.u32 %s1767_s25, %s3630_s14 }
  0x35   : > { %s1770_s27 = sshll.u32 %s268_s19, 3  ;;  %s3128_s17 = sshll.u32 %s3630_s14, 3 }
  0x36   : > { %s3130_s18 = scalar_lea.vmem [#allocation4], %s1764_s22   ;;  %p1772_p5 = scmp.eq.s32.totalorder %s265_s21, 0 }
  0x37   : > { %p275_p6 = scmp.lt.u32.totalorder (!%p1772_p5), %s3128_s17, 8 }
  0x38   : > { %s3126_s9 = scalar_lea.vmem %s3581_s0, %s1770_s27   ;;  %274 = sbr.rel (%p1772_p5) target bundleno = 181 (0xb5), region = 44 }
  0x3d   : > { %278 = sbr.rel (%p275_p6) target bundleno = 145 (0x91), region = 48  ;;  %s3134_s12 = sand.u32 (!%p275_p6), 7, %s3128_s17  }
  0x3e   : > { %p331_p7 = scmp.eq.s32.totalorder (!%p275_p6), %s3134_s12, 0  ;;  %p1773_p8 = scmp.ne.s32.totalorder (!%p275_p6), %s3134_s12, 0 }
  0x42   : > { %334 = sbr.rel (%p1773_p8) target bundleno = 88 (0x58), region = 70  ;;  %s335_s7 = sshrl.u32 (!%p1773_p8), %s3128_s17, 3 }
  0x43   : > { %s337_s27 = sshrl.u32 (!%p1773_p8), %s335_s7, 4  ;;  %s3139_s6 = sand.u32 (!%p1773_p8), 15, %s335_s7  }
  0x44   : > { %s1862_s16 = sshll.u32 (!%p1773_p8), %s337_s27, 7  ;;  %s3149_s22 = smul.u32 (!%p1773_p8), %s3139_s6, %s3628_s20 }
  0x45   : > { %s3142_s21 = scalar_lea.vmem (!%p1773_p8), %s3126_s9, %s1862_s16   ;;  %s3145_s25 = scalar_lea.vmem (!%p1773_p8), %s3130_s18, %s1862_s16 [#allocation4]  }
  0x46   : > { %p1788_p10 = scmp.le.s32.totalorder (!%p1773_p8), %s3149_s22, 0 }
  0x47   : > { %s3582_s23 = smov (!%p1788_p10), %s3145_s25  ;;  %s3583_s14 = smov (!%p1788_p10), %s3142_s21 }
  0x48   : > { %1573 = sbr.rel (%p1788_p10) target bundleno = 88 (0x58), region = 308  ;;  %s3158_s19 = smov (!%p1788_p10), 0  }
  0x49   : > { %s3160_s7 = smov (!%p1788_p10), 0   ;;  %s3162_s27 = smov (!%p1788_p10), 0  }
  0x4d LB: >> { %v512_v1 = vld [vmem:[%s2821_s14] sm:$0xff]  ;;  %s514_s16 = sadd.s32 1, %s2825_s19  ;;  %s517_s0 = sadd.s32 1, %s2829_s7  ;;  %s2833_s27 = sphi %s3162_s27, %s505_s27   ;;  %s2829_s7 = sphi %s3160_s7, %s3585_s7   ;;  %s2825_s19 = sphi %s3158_s19, %s3584_s19   ;;  %s2821_s14 = sphi %s3583_s14, %s527_s14   ;;  %s2817_s23 = sphi %s3582_s23, %s528_s23  }
  0x4e   : >> { %513 = vst [vmem:[%s2817_s23] sm:$0xff] %v512_v1  ;;  %p515_p11 = scmp.ge.s32.totalorder %s514_s16, %s3139_s6  ;;  %s505_s27 = sadd.s32 1, %s2833_s27  }
  0x4f   : >> { %p504_p0 = scmp.ge.s32.totalorder %s505_s27, %s3149_s22 }
  0x50   : >> { %s3632_s16 = smov (%p515_p11, %s514_s16), 0  ;;  %s3634_s0 = smov (!%p515_p11, %s517_s0), %s2829_s7 }
  0x51   : >> { %p519_p13 = scmp.ge.s32.totalorder %s3634_s0, %s3628_s20  ;;  %s1789_s28 = sshll.u32 %s3632_s16, 3 }
  0x52   : >> { %s3584_s19 = smov %s3632_s16 }
  0x53   : >> { %s3636_s0 = smov (%p519_p13, %s3634_s0), 0  ;;  %507 = sbr.rel (!%p504_p0) target bundleno = 77 (0x4d), region = 314 }
  0x54   : >> { %s521_s5 = smul.u32 24, %s3636_s0  ;;  %s1790_s4 = sshll.u32 %s3636_s0, 4 }
  0x55   : >> { %s526_s3 = sadd.s32 %s1790_s4, %s1789_s28  ;;  %s3585_s7 = smov %s3636_s0 }
  0x56   : >> { %s523_s2 = sadd.s32 %s1789_s28, %s521_s5  ;;  %s528_s23 = scalar_lea.vmem %s3145_s25, %s526_s3 [#allocation4]  }
  0x57   : >> { %s527_s14 = scalar_lea.vmem %s3142_s21, %s523_s2  }
  0x58 PF: > { %531 = sbr.rel (%p331_p7) target bundleno = 145 (0x91), region = 95  ;;  %s533_s2 = ssub.s32 (!%p331_p7), %s3128_s17, %s3134_s12 }
  0x59   : > { %s537_s0 = sshrl.u32 (!%p331_p7), %s3128_s17, 3  ;;  %s3190_s3 = scalar_lea.vmem (!%p331_p7), %s3126_s9, %s533_s2  }
  0x5a   : > { %s3193_s4 = scalar_lea.vmem (!%p331_p7), %s3130_s18, %s533_s2 [#allocation4]   ;;  %s3196_s5 = sshrl.u32 (!%p331_p7), %s3628_s20, 1 }
  0x5b   : > { %s539_s28 = sshrl.u32 (!%p331_p7), %s537_s0, 4  ;;  %s3199_s6 = sand.u32 (!%p331_p7), 1, %s3628_s20  }
  0x5c   : > { %s3203_s22 = sand.u32 (!%p331_p7), 15, %s537_s0   ;;  %s1865_s23 = sshll.u32 (!%p331_p7), %s539_s28, 7 }
  0x5d   : > { %s3206_s14 = scalar_lea.vmem %s3126_s9, %s1865_s23   ;;  %s3209_s19 = scalar_lea.vmem %s3130_s18, %s1865_s23 [#allocation4]  }
  0x5e   : > { %s3213_s7 = smul.u32 %s3203_s22, %s3628_s20 }
  0x60   : > { %p1806_p2 = scmp.le.s32.totalorder %s3213_s7, 0 }
  0x61   : > { %s3586_s27 = smov (!%p1806_p2), %s3209_s19  ;;  %s3587_s16 = smov (!%p1806_p2), %s3206_s14 }
  0x62   : > { %1624 = sbr.rel (%p1806_p2) target bundleno = 114 (0x72), region = 341  ;;  %s3222_s2 = smov (!%p1806_p2), 0  }
  0x63   : > { %s3224_s0 = smov (!%p1806_p2), 0   ;;  %s3226_s28 = smov (!%p1806_p2), 0  }
  0x67 LB: >> { %v714_v2 = vld [vmem:[%s2841_s16] sm:$0xff]  ;;  %s716_s23 = sadd.s32 1, %s2845_s2  ;;  %s719_s25 = sadd.s32 1, %s2849_s0  ;;  %s2853_s28 = sphi %s3226_s28, %s707_s28   ;;  %s2849_s0 = sphi %s3224_s0, %s3589_s0   ;;  %s2845_s2 = sphi %s3222_s2, %s3588_s2   ;;  %s2841_s16 = sphi %s3587_s16, %s729_s16   ;;  %s2837_s27 = sphi %s3586_s27, %s730_s27  }
  0x68   : >> { %715 = vst [vmem:[%s2837_s27] sm:$0xff] %v714_v2  ;;  %p717_p3 = scmp.ge.s32.totalorder %s716_s23, %s3203_s22  ;;  %s707_s28 = sadd.s32 1, %s2853_s28  }
  0x69   : >> { %p706_p5 = scmp.ge.s32.totalorder %s707_s28, %s3213_s7 }
  0x6a   : >> { %s3638_s23 = smov (%p717_p3, %s716_s23), 0  ;;  %s3640_s25 = smov (!%p717_p3, %s719_s25), %s2849_s0 }
  0x6b   : >> { %p721_p4 = scmp.ge.s32.totalorder %s3640_s25, %s3628_s20  ;;  %s1807_s21 = sshll.u32 %s3638_s23, 3 }
  0x6c   : >> { %s3588_s2 = smov %s3638_s23 }
  0x6d   : >> { %s3642_s25 = smov (%p721_p4, %s3640_s25), 0  ;;  %709 = sbr.rel (!%p706_p5) target bundleno = 103 (0x67), region = 347 }
  0x6e   : >> { %s723_s10 = smul.u32 24, %s3642_s25  ;;  %s1808_s26 = sshll.u32 %s3642_s25, 4 }
  0x6f   : >> { %s728_s15 = sadd.s32 %s1808_s26, %s1807_s21  ;;  %s3589_s0 = smov %s3642_s25 }
  0x70   : >> { %s725_s29 = sadd.s32 %s1807_s21, %s723_s10  ;;  %s730_s27 = scalar_lea.vmem %s3209_s19, %s728_s15 [#allocation4]  }
  0x71   : >> { %s729_s16 = scalar_lea.vmem %s3206_s14, %s725_s29  }
  0x72 PF: > { %s2951_s8 = smov 1   ;;  %p1811_p6 = scmp.le.s32.totalorder %s3196_s5, 0 }
  0x73   : > { %s731_s26 = sshll.u32 %s2951_s8, %s3134_s12  ;;  %s2855_s29 = smov (!%p1811_p6), %s3193_s4  }
  0x74   : > { %s3249_s10 = sadd.s32 4294967295, %s731_s26  ;;  %1640 = sbr.rel (%p1811_p6) target bundleno = 129 (0x81), region = 352 }
  0x75   : > { %s2859_s15 = smov (!%p1811_p6), %s3190_s3   ;;  %s2863_s21 = smov (!%p1811_p6), 0  }
  0x76   : > { %s2867_s23 = smov (!%p1811_p6), 0  }
  0x79 LB: >> { %v743_v3 = vld [vmem:[%s2861_s15] sm:%s3249_s10]  ;;  %v745_v4 = vld [vmem:[%s2861_s15 + $0x18] sm:%s3249_s10]  ;;  %s747_s8 = sadd.s32 1, %s2865_s21  ;;  %s737_s23 = sadd.s32 1, %s2869_s23   ;;  %s2869_s23 = sphi %s2867_s23, %s737_s23   ;;  %s2865_s21 = sphi %s2863_s21, %s2864_s21   ;;  %s2861_s15 = sphi %s2859_s15, %s752_s15   ;;  %s2857_s29 = sphi %s2855_s29, %s753_s29  }
  0x7a   : >> { %744 = vst [vmem:[%s2857_s29] sm:%s3249_s10] %v743_v3  ;;  %p748_p7 = scmp.ge.s32.totalorder %s747_s8, %s3196_s5  ;;  %p736_p8 = scmp.ge.s32.totalorder %s737_s23, %s3196_s5 }
  0x7b   : >> { %746 = vst [vmem:[%s2857_s29 + $0x10] sm:%s3249_s10] %v745_v4 }
  0x7c   : >> { %s3644_s8 = smov (%p748_p7, %s747_s8), 0  ;;  %739 = sbr.rel (!%p736_p8) target bundleno = 121 (0x79), region = 358 }
  0x7d   : >> { %s750_s12 = smul.u32 48, %s3644_s8  ;;  %s1812_s25 = sshll.u32 %s3644_s8, 5 }
  0x7e   : >> { %s753_s29 = scalar_lea.vmem %s3193_s4, %s1812_s25 [#allocation4]   ;;  %s2864_s21 = smov %s3644_s8  }
  0x7f   : >> { %s752_s15 = scalar_lea.vmem %s3190_s3, %s750_s12  }
  0x81 PF: > { %s3590_s22 = smul.u32 48, %s3196_s5  ;;  %s3591_s19 = sshll.u32 %s3196_s5, 5 }
  0x82   : > { %s760_s7 = scalar_lea.vmem %s3193_s4, %s3591_s19 [#allocation4]   ;;  %p1816_p10 = scmp.le.s32.totalorder %s3199_s6, 0 }
  0x83   : > { %s758_s14 = scalar_lea.vmem %s3190_s3, %s3590_s22   ;;  %s2871_s27 = smov (!%p1816_p10), %s760_s7  }
  0x84   : > { %1654 = sbr.rel (%p1816_p10) target bundleno = 145 (0x91), region = 363  ;;  %s2875_s16 = smov (!%p1816_p10), %s758_s14  }
  0x85   : > { %s2879_s2 = smov (!%p1816_p10), 0   ;;  %s2883_s0 = smov (!%p1816_p10), 0  }
  0x89 LB: >> { %v770_v5 = vld [vmem:[%s2877_s16] sm:%s3249_s10]  ;;  %s772_s3 = sadd.s32 1, %s2881_s2  ;;  %s764_s0 = sadd.s32 1, %s2885_s0   ;;  %s2885_s0 = sphi %s2883_s0, %s764_s0   ;;  %s2881_s2 = sphi %s2879_s2, %s2880_s2   ;;  %s2877_s16 = sphi %s2875_s16, %s777_s16   ;;  %s2873_s27 = sphi %s2871_s27, %s778_s27  }
  0x8a   : >> { %771 = vst [vmem:[%s2873_s27] sm:%s3249_s10] %v770_v5  ;;  %p773_p11 = scmp.ge.s32.totalorder %s772_s3, %s3199_s6  ;;  %p763_p13 = scmp.ge.s32.totalorder %s764_s0, %s3199_s6 }
  0x8c   : >> { %s3646_s3 = smov (%p773_p11, %s772_s3), 0  ;;  %766 = sbr.rel (!%p763_p13) target bundleno = 137 (0x89), region = 369 }
  0x8d   : >> { %s775_s4 = smul.u32 24, %s3646_s3  ;;  %s1817_s5 = sshll.u32 %s3646_s3, 4 }
  0x8e   : >> { %s778_s27 = scalar_lea.vmem %s760_s7, %s1817_s5 [#allocation4]   ;;  %s2880_s2 = smov %s3646_s3  }
  0x8f   : >> { %s777_s16 = scalar_lea.vmem %s758_s14, %s775_s4  }
  0x91 PF: > { %p1818_p0 = scmp.ge.u32.totalorder %s3128_s17, 8 }
  0x92   : > { %s3275_s28 = sshrl.u32 (!%p1818_p0), %s3628_s20, 1  ;;  %s2952_s26 = smov (!%p1818_p0), 1  }
  0x93   : > { %281 = sbr.rel (%p1818_p0) target bundleno = 181 (0xb5), region = 52  ;;  %s282_s29 = sshll.u32 (!%p1818_p0), %s2952_s26, %s3128_s17 }
  0x94   : > { %s3278_s15 = sadd.s32 (!%p1818_p0), 4294967295, %s282_s29  ;;  %p1820_p2 = scmp.le.s32.totalorder (!%p1818_p0), %s3275_s28, 0 }
  0x98   : > { %1668 = sbr.rel (%p1820_p2) target bundleno = 165 (0xa5), region = 374  ;;  %s2887_s21 = smov (!%p1820_p2), %s3130_s18  }
  0x99   : > { %s2891_s6 = smov (!%p1820_p2), %s3126_s9   ;;  %s2895_s10 = smov (!%p1820_p2), 0  }
  0x9a   : > { %s2899_s23 = smov (!%p1820_p2), 0  }
  0x9d LB: >> { %v294_v6 = vld [vmem:[%s2893_s6] sm:%s3278_s15]  ;;  %v296_v7 = vld [vmem:[%s2893_s6 + $0x18] sm:%s3278_s15]  ;;  %s298_s17 = sadd.s32 1, %s2897_s10  ;;  %s288_s23 = sadd.s32 1, %s2901_s23   ;;  %s2901_s23 = sphi %s2899_s23, %s288_s23   ;;  %s2897_s10 = sphi %s2895_s10, %s2896_s10   ;;  %s2893_s6 = sphi %s2891_s6, %s303_s6   ;;  %s2889_s21 = sphi %s2887_s21, %s304_s21  }
  0x9e   : >> { %295 = vst [vmem:[%s2889_s21] sm:%s3278_s15] %v294_v6  ;;  %p299_p3 = scmp.ge.s32.totalorder %s298_s17, %s3275_s28  ;;  %p287_p4 = scmp.ge.s32.totalorder %s288_s23, %s3275_s28 }
  0x9f   : >> { %297 = vst [vmem:[%s2889_s21 + $0x10] sm:%s3278_s15] %v296_v7 }
  0xa0   : >> { %s3648_s17 = smov (%p299_p3, %s298_s17), 0  ;;  %290 = sbr.rel (!%p287_p4) target bundleno = 157 (0x9d), region = 380 }
  0xa1   : >> { %s301_s8 = smul.u32 48, %s3648_s17  ;;  %s1821_s12 = sshll.u32 %s3648_s17, 5 }
  0xa2   : >> { %s304_s21 = scalar_lea.vmem %s3130_s18, %s1821_s12 [#allocation4]   ;;  %s2896_s10 = smov %s3648_s17  }
  0xa3   : >> { %s303_s6 = scalar_lea.vmem %s3126_s9, %s301_s8  }
  0xa5 PF: > { %s3292_s25 = sand.u32 1, %s3628_s20   ;;  %s1823_s22 = smul.u32 48, %s3275_s28 }
  0xa6   : > { %s1868_s14 = sshll.u32 %s3275_s28, 5  ;;  %p1825_p5 = scmp.le.s32.totalorder %s3292_s25, 0 }
  0xa7   : > { %s309_s19 = scalar_lea.vmem %s3126_s9, %s1823_s22   ;;  %s311_s7 = scalar_lea.vmem %s3130_s18, %s1868_s14 [#allocation4]  }
  0xa8   : > { %1682 = sbr.rel (%p1825_p5) target bundleno = 181 (0xb5), region = 385  ;;  %s2903_s27 = smov (!%p1825_p5), %s311_s7  }
  0xa9   : > { %s2907_s16 = smov (!%p1825_p5), %s309_s19   ;;  %s2911_s2 = smov (!%p1825_p5), 0  }
  0xaa   : > { %s2915_s0 = smov (!%p1825_p5), 0  }
  0xad LB: >> { %v321_v8 = vld [vmem:[%s2909_s16] sm:%s3278_s15]  ;;  %s323_s20 = sadd.s32 1, %s2913_s2  ;;  %s315_s0 = sadd.s32 1, %s2917_s0   ;;  %s2917_s0 = sphi %s2915_s0, %s315_s0   ;;  %s2913_s2 = sphi %s2911_s2, %s2912_s2   ;;  %s2909_s16 = sphi %s2907_s16, %s328_s16   ;;  %s2905_s27 = sphi %s2903_s27, %s329_s27  }
  0xae   : >> { %322 = vst [vmem:[%s2905_s27] sm:%s3278_s15] %v321_v8  ;;  %p324_p6 = scmp.ge.s32.totalorder %s323_s20, %s3292_s25  ;;  %p314_p7 = scmp.ge.s32.totalorder %s315_s0, %s3292_s25 }
  0xb0   : >> { %s3650_s20 = smov (%p324_p6, %s323_s20), 0  ;;  %317 = sbr.rel (!%p314_p7) target bundleno = 173 (0xad), region = 391 }
  0xb1   : >> { %s326_s9 = smul.u32 24, %s3650_s20  ;;  %s1826_s18 = sshll.u32 %s3650_s20, 4 }
  0xb2   : >> { %s329_s27 = scalar_lea.vmem %s311_s7, %s1826_s18 [#allocation4]   ;;  %s2912_s2 = smov %s3650_s20  }
  0xb3   : >> { %s328_s16 = scalar_lea.vmem %s309_s19, %s326_s9  }
  0xb5 PF: > { %782 = sbr.rel (!%p3088_p9) target bundleno = 217 (0xd9), region = 134  ;;  %s783_s3 = sand.u32 (%p3088_p9), 1, %s2785_s30  }
  0xb6   : > { %s1828_s4 = sshll.u32 (%p3088_p9), %s2805_s11, 5  ;;  %s1827_s5 = sshll.u32 (%p3088_p9), %s783_s3, 8 }
  0xb7   : > { %s789_s28 = ssub.s32 (%p3088_p9), 38, %s1828_s4  ;;  %s3310_s15 = scalar_lea.sflag (%p3088_p9), [#allocation6], %s783_s3 }
  0xb8   : > { %p790_p8 = scmp.lt.s32.totalorder (%p3088_p9), %s789_s28, 32  ;;  %s787_s6 = scalar_lea.vmem (%p3088_p9), [#allocation5], %s1827_s5 }
  0xba   : > { %s3652_s28 = smov (!%p790_p8, %s789_s28), 32 }
  0xbb   : > { %s1829_s26 = sshll.u32 %s3652_s28, 3 }
  0xbc   : > { %s793_s29 = ssub.s32 256, %s1829_s26 }
  0xbd   : > { %s794_s21 = sshll.u32 %s793_s29, 4 }
  0xbe   : > { %795 = vsyncadd %s3310_s15, %s794_s21  ;;  %p3313_p9 = scmp.ne.s32.totalorder %s1829_s26, 0  ;;  %s1869_s10 = sshll.u32 %s2805_s11, 8 }
  0xbf   : > { %s798_s8 = scalar_lea.hbm %s3536_s1, %s1869_s10  ;;  %s3321_s12 = sshll.u32 %s787_s6, 4  ;;  %s803_s12 = int_to_ptr.vmem [resolvable:$true] %s3321_s12 }
  0xc0   : > { %s800_s25 = sshll.u32 %s798_s8, 4  ;;  %s1833_s22 = sshll.u32 %s3652_s28, 7  ;;  %s3324_s25 = int_to_ptr.hbm [resolvable:$true] %s800_s25 }
  0xc1   : > { %s2460_s14 = sshra.s32 %s3324_s25, 4  ;;  %s2462_s19 = sshrl.u32 %s1833_s22, 4  ;;  %s2461_s14 = int_to_ptr.hbm [resolvable:$true] %s2460_s14 }
  0xc2   : > { %s2467_s7 = scalar_lea.hbm %s2461_s14, %s2462_s19  ;;  %s2471_s2 = scalar_lea.hbm %s3536_s1, 304 }
  0xc3   : > { %p2468_p10 = scmp.ne.s32.totalorder %s2461_s14, %s2467_s7  ;;  %p2473_p0 = scmp.lt.s32.totalorder %s2471_s2, %s2467_s7 }
  0xc5   : > { %p2469_p11 = pnand %p2468_p10, %p3313_p9 }
  0xc7   : > { %p2470_p13 = pneg %p2469_p11 }
  0xc9   : > { %p2475_p2 = pnand %p2473_p0, %p2470_p13 }
  0xcb   : > { %2478 = shalt.err (!%p2475_p2)
}
  0xcc   : > { %s2479_s0 = sshra.s32 %s803_s12, 4  ;;  %s2953_s9 = smov [#allocation5]   ;;  %s2480_s0 = int_to_ptr.vmem [resolvable:$true] %s2479_s0 }
  0xcd   : > { %s2486_s20 = scalar_lea.vmem %s2480_s0, %s2462_s19  ;;  %s2490_s18 = scalar_lea.vmem %s2953_s9, 512 }
  0xce   : > { %p2487_p3 = scmp.ne.s32.totalorder %s2480_s0, %s2486_s20  ;;  %p2492_p6 = scmp.lt.s32.totalorder %s2490_s18, %s2486_s20 }
  0xd0   : > { %p2488_p4 = pnand %p2487_p3, %p3313_p9 }
  0xd2   : > { %p2489_p5 = pneg %p2488_p4 }
  0xd4   : > { %p2494_p7 = pnand %p2492_p6, %p2489_p5 }
  0xd6   : > { %2497 = shalt.err (!%p2494_p7)
}
  0xd7   : > { %s2954_s3 = smov 128   ;;  %s2955_s4 = smov 8  }
  0xd8   : > { %808 = dma.hbm_to_vmem [thread:$0]  (%p3313_p9), %s3324_s25, %s1833_s22, %s803_s12, %s3310_s15, %s2954_s3, %s2954_s3, %s2955_s4  }
  0xd9 PF: > { %p1834_p8 = scmp.ge.s32.totalorder %s2813_s13, 1  ;;  %p810_p10 = scmp.lt.s32.totalorder %s2813_s13, 5 }
  0xdb   : > { %p811_p11 = pnand %p1834_p8, %p810_p10 }
  0xdc   : > { %s3593_s5 = sld [smem:[#allocation12_spill]] (!%p811_p11) }
  0xdd   : > { %814 = sbr.rel (%p811_p11) target bundleno = 909 (0x38d), region = 138  ;;  %s3594_s26 = sld [smem:[#allocation11_spill]] (!%p811_p11) }
  0xe2   : > { %s817_s21 = sand.u32 1, %s3593_s5  }
  0xe3   : > { %s823_s6 = sand.u32 1, %s3594_s26   ;;  %s1835_s10 = sshll.u32 %s817_s21, 5 }
  0xe4   : > { %s1836_s23 = sshll.u32 %s823_s6, 8  ;;  %s3351_s17 = scalar_lea.vmem [#allocation4], %s1835_s10 }
  0xe5   : > { %s824_s24 = scalar_lea.sflag [#allocation6], %s823_s6  ;;  %s3353_s28 = scalar_lea.vmem [#allocation5], %s1836_s23 }
  0xe6   : > { %2764 = dma.done.wait (%p3097_p12), %s824_s24, 4096  }
  0xe7   : > { %2766 = vsyncadd (%p3097_p12), %s824_s24, 4294963200  ;;  %s3596_s15 = sld [smem:[#allocation9_spill]] }
  0xe8   : > { %s3597_s22 = sld [smem:[#allocation14_spill]] }
  0xed   : > { %s859_s8 = sand.u32 1, %s3596_s15  }
  0xee   : > { %s1837_s12 = sshll.u32 %s859_s8, 4  ;;  %p1838_p9 = scmp.ne.s32.totalorder %s3597_s22, 0 }
  0xef   : > { %s3360_s25 = scalar_lea.vmem [#allocation7], %s1837_s12   ;;  %s3598_s7 = sld [smem:[#allocation25_spill]] (!%p1838_p9) }
  0xf0   : > { %885 = sbr.rel (%p1838_p9) target bundleno = 248 (0xf8), region = 150 }
  0xf5   : > { %v2456_v9 = vld [vmem:[%s3598_s7] ss:$0 sm:$0xff] }
  0xf6   : > { %890 = vst [vmem:[#allocation2] sm:$0xff] %v2456_v9 }
  0xf7   : > { %891 = vst [vmem:[#allocation2 + $0x8] sm:$0xff] %v2456_v9 }
  0xf8 PF: > { %s3599_s27 = sld [smem:[#allocation14_spill]] }
  0xfe   : > { %p1839_p13 = scmp.ge.s32.totalorder %s3599_s27, 1 }
 0x100   : > { %895 = sbr.rel (%p1839_p13) target bundleno = 431 (0x1af), region = 154 }
 0x105   : > { %v917_v10 = vld [vmem:[%s3353_s28 + $0x78] sm:$0xff]  ;;  %v916_v12 = vld [vmem:[%s3353_s28 + $0x70] sm:$0xff]  ;;  %v915_v14 = vld [vmem:[%s3353_s28 + $0x68] sm:$0xff] }
 0x106   : > { %v933_v11 = vld [vmem:[%s3353_s28 + $0xf8] sm:$0xff]  ;;  %1873 = vmatpush.msra.mxu2 %v917_v10  ;;  %v932_v13 = vld [vmem:[%s3353_s28 + $0xf0] sm:$0xff]  ;;  %v931_v15 = vld [vmem:[%s3353_s28 + $0xe8] sm:$0xff]  ;;  %934 = vmatpush.msra.mxu0 %v917_v10 }
 0x107   : > { %1889 = vmatpush.msra.mxu3 %v933_v11  ;;  %957 = vmatpush.msra.mxu1 %v933_v11  ;;  %v914_v16 = vld [vmem:[%s3353_s28 + $0x60] sm:$0xff]  ;;  %v913_v18 = vld [vmem:[%s3353_s28 + $0x58] sm:$0xff]  ;;  %v912_v20 = vld [vmem:[%s3353_s28 + $0x50] sm:$0xff] }
 0x108   : > { %1874 = vmatpush.msra.mxu2 %v916_v12  ;;  %v930_v17 = vld [vmem:[%s3353_s28 + $0xe0] sm:$0xff]  ;;  %935 = vmatpush.msra.mxu0 %v916_v12  ;;  %v929_v19 = vld [vmem:[%s3353_s28 + $0xd8] sm:$0xff]  ;;  %v928_v21 = vld [vmem:[%s3353_s28 + $0xd0] sm:$0xff] }
 0x109   : > { %1890 = vmatpush.msra.mxu3 %v932_v13  ;;  %958 = vmatpush.msra.mxu1 %v932_v13  ;;  %v911_v22 = vld [vmem:[%s3353_s28 + $0x48] sm:$0xff]  ;;  %v910_v24 = vld [vmem:[%s3353_s28 + $0x40] sm:$0xff]  ;;  %v909_v26 = vld [vmem:[%s3353_s28 + $0x38] sm:$0xff] }
 0x10a   : > { %1875 = vmatpush.msra.mxu2 %v915_v14  ;;  %936 = vmatpush.msra.mxu0 %v915_v14  ;;  %v927_v23 = vld [vmem:[%s3353_s28 + $0xc8] sm:$0xff]  ;;  %v926_v25 = vld [vmem:[%s3353_s28 + $0xc0] sm:$0xff]  ;;  %v925_v27 = vld [vmem:[%s3353_s28 + $0xb8] sm:$0xff] }
 0x10b   : > { %1891 = vmatpush.msra.mxu3 %v931_v15  ;;  %959 = vmatpush.msra.mxu1 %v931_v15  ;;  %v908_v28 = vld [vmem:[%s3353_s28 + $0x30] sm:$0xff]  ;;  %v907_v30 = vld [vmem:[%s3353_s28 + $0x28] sm:$0xff]  ;;  %v906_v32 = vld [vmem:[%s3353_s28 + $0x20] sm:$0xff] }
 0x10c   : > { %1876 = vmatpush.msra.mxu2 %v914_v16  ;;  %937 = vmatpush.msra.mxu0 %v914_v16  ;;  %v924_v29 = vld [vmem:[%s3353_s28 + $0xb0] sm:$0xff]  ;;  %v923_v31 = vld [vmem:[%s3353_s28 + $0xa8] sm:$0xff]  ;;  %v922_v33 = vld [vmem:[%s3353_s28 + $0xa0] sm:$0xff] }
 0x10d   : > { %1892 = vmatpush.msra.mxu3 %v930_v17  ;;  %960 = vmatpush.msra.mxu1 %v930_v17  ;;  %v905_v34 = vld [vmem:[%s3353_s28 + $0x18] sm:$0xff]  ;;  %v904_v36 = vld [vmem:[%s3353_s28 + $0x10] sm:$0xff]  ;;  %v903_v38 = vld [vmem:[%s3353_s28 + $0x8] sm:$0xff] }
 0x10e   : > { %1877 = vmatpush.msra.mxu2 %v913_v18  ;;  %938 = vmatpush.msra.mxu0 %v913_v18  ;;  %v921_v35 = vld [vmem:[%s3353_s28 + $0x98] sm:$0xff]  ;;  %v920_v37 = vld [vmem:[%s3353_s28 + $0x90] sm:$0xff]  ;;  %v919_v39 = vld [vmem:[%s3353_s28 + $0x88] sm:$0xff] }
 0x10f   : > { %1893 = vmatpush.msra.mxu3 %v929_v19  ;;  %961 = vmatpush.msra.mxu1 %v929_v19  ;;  %v902_v40 = vld [vmem:[%s3353_s28] sm:$0xff]  ;;  %v900_v42 = vld [vmem:[%s3351_s17 + $0x10] sm:$0xff]  ;;  %v901_v43 = vld [vmem:[%s3351_s17 + $0x18] sm:$0xff] }
 0x110   : > { %1878 = vmatpush.msra.mxu2 %v912_v20  ;;  %939 = vmatpush.msra.mxu0 %v912_v20  ;;  %v918_v41 = vld [vmem:[%s3353_s28 + $0x80] sm:$0xff]  ;;  %v899_v45 = vld [vmem:[%s3351_s17 + $0x8] sm:$0xff]  ;;  %v897_v52 = vld [vmem:[#allocation2 + $0x8] sm:$0xff] }
 0x111   : > { %1894 = vmatpush.msra.mxu3 %v928_v21  ;;  %962 = vmatpush.msra.mxu1 %v928_v21  ;;  %v898_v44 = vld [vmem:[%s3351_s17] sm:$0xff]  ;;  %v896_v47 = vld [vmem:[#allocation2] sm:$0xff] }
 0x112   : > { %1879 = vmatpush.msra.mxu2 %v911_v22  ;;  %940 = vmatpush.msra.mxu0 %v911_v22 }
 0x113   : > { %1895 = vmatpush.msra.mxu3 %v927_v23  ;;  %963 = vmatpush.msra.mxu1 %v927_v23 }
 0x114   : > { %1880 = vmatpush.msra.mxu2 %v910_v24  ;;  %941 = vmatpush.msra.mxu0 %v910_v24 }
 0x115   : > { %1896 = vmatpush.msra.mxu3 %v926_v25  ;;  %964 = vmatpush.msra.mxu1 %v926_v25 }
 0x116   : > { %1881 = vmatpush.msra.mxu2 %v909_v26  ;;  %942 = vmatpush.msra.mxu0 %v909_v26 }
 0x117   : > { %1897 = vmatpush.msra.mxu3 %v925_v27  ;;  %965 = vmatpush.msra.mxu1 %v925_v27 }
 0x118   : > { %1882 = vmatpush.msra.mxu2 %v908_v28  ;;  %943 = vmatpush.msra.mxu0 %v908_v28 }
 0x119   : > { %1898 = vmatpush.msra.mxu3 %v924_v29  ;;  %966 = vmatpush.msra.mxu1 %v924_v29 }
 0x11a   : > { %1883 = vmatpush.msra.mxu2 %v907_v30  ;;  %944 = vmatpush.msra.mxu0 %v907_v30 }
 0x11b   : > { %1899 = vmatpush.msra.mxu3 %v923_v31  ;;  %967 = vmatpush.msra.mxu1 %v923_v31 }
 0x11c   : > { %1884 = vmatpush.msra.mxu2 %v906_v32  ;;  %945 = vmatpush.msra.mxu0 %v906_v32 }
 0x11d   : > { %1900 = vmatpush.msra.mxu3 %v922_v33  ;;  %968 = vmatpush.msra.mxu1 %v922_v33 }
 0x11e   : > { %1885 = vmatpush.msra.mxu2 %v905_v34  ;;  %946 = vmatpush.msra.mxu0 %v905_v34 }
 0x11f   : > { %1901 = vmatpush.msra.mxu3 %v921_v35  ;;  %969 = vmatpush.msra.mxu1 %v921_v35 }
 0x120   : > { %1886 = vmatpush.msra.mxu2 %v904_v36  ;;  %947 = vmatpush.msra.mxu0 %v904_v36 }
 0x121   : > { %1902 = vmatpush.msra.mxu3 %v920_v37  ;;  %970 = vmatpush.msra.mxu1 %v920_v37 }
 0x122   : > { %1887 = vmatpush.msra.mxu2 %v903_v38  ;;  %948 = vmatpush.msra.mxu0 %v903_v38 }
 0x123   : > { %1903 = vmatpush.msra.mxu3 %v919_v39  ;;  %971 = vmatpush.msra.mxu1 %v919_v39 }
 0x124   : > { %1888 = vmatpush.msra.mxu2 %v902_v40  ;;  %949 = vmatpush.msra.mxu0 %v902_v40 }
 0x125   : > { %1904 = vmatpush.msra.mxu3 %v918_v41  ;;  %953 = vmatmul.f32.vlgmr.msra.gmra.mxu2 %v900_v42 }
 0x126   : > { %976 = vmatmul.f32.vlgmr.msra.gmra.mxu3 %v901_v43  ;;  %972 = vmatpush.msra.mxu1 %v918_v41 }
 0x127   : > { %950 = vmatmul.f32.vlgmr.msra.gmra.mxu0 %v898_v44  ;;  %973 = vmatmul.f32.vlgmr.msra.gmra.mxu1 %v899_v45 }
 0x1a4   : > { %v951_v46 = vpop.f32.mrf.mxu0  ;;  %v974_v48 = vpop.f32.mrf.mxu1 }
 0x1a5   : > { %v975_v49 = vadd.f32 %v974_v48, %v951_v46 }
 0x1a7   : > { %v980_v50 = vadd.f32 %v975_v49, %v896_v47 }
 0x1a8   : > { %v954_v51 = vpop.f32.mrf.mxu2 }
 0x1a9   : > { %v977_v53 = vpop.f32.mrf.mxu3  ;;  %982 = vst [vmem:[#allocation2] sm:$0xff] %v980_v50 }
 0x1aa   : > { %v978_v54 = vadd.f32 %v977_v53, %v954_v51 }
 0x1ac   : > { %v981_v55 = vadd.f32 %v978_v54, %v897_v52 }
 0x1ae   : > { %983 = vst [vmem:[#allocation2 + $0x8] sm:$0xff] %v981_v55 }
 0x1af PF: > { %s3600_s16 = sld [smem:[#allocation14_spill]] }
 0x1b5   : > { %p1840_p12 = scmp.ne.s32.totalorder %s3600_s16, 1 }
 0x1b6   : > { %s3601_s20 = sld [smem:[#allocation26_spill]] (!%p1840_p12) }
 0x1b7   : > { %987 = sbr.rel (%p1840_p12) target bundleno = 860 (0x35c), region = 158  ;;  %s3602_s21 = sld [smem:[#allocation27_spill]] (!%p1840_p12) }
 0x1b8   : > { %s3603_s23 = sld [smem:[#allocation28_spill]] (!%p1840_p12) }
 0x1bc   : > { %v1024_v56 = vlaneseq  ;;  %v2956_v57 = vmov 0.0   ;;  %v1201_v59 = vld [vmem:[%s3601_s20 + $0x78] sm:$0xff]  ;;  %v1200_v60 = vld [vmem:[%s3601_s20 + $0x70] sm:$0xff]  ;;  %v1199_v63 = vld [vmem:[%s3601_s20 + $0x68] sm:$0xff]  ;;  %vm1237_vm2 = vcmask 523264   ;;  %vm1250_vm3 = vcmask 7168  }
 0x1bd   : > { %1170 = vmatpush.msra.mxu1 %v2956_v57  ;;  %1206 = vmatpush.msra.mxu2 %v1201_v59  ;;  %v997_v61 = vld [vmem:[%s3353_s28 + $0x28] sm:$0xff]  ;;  %v996_v0 = vld [vmem:[%s3353_s28 + $0x20] sm:$0xff]  ;;  %v995_v2 = vld [vmem:[%s3353_s28 + $0x18] sm:$0xff] }
 0x1be   : > { %v1028_v58 = vshrl.u32 %v1024_v56, 7  ;;  %1171 = vmatmul.f32.vlgmr.msra.gmra.mxu1 %v2956_v57  ;;  %1905 = vmatpush.msra.mxu3 %v1201_v59  ;;  %v1198_v1 = vld [vmem:[%s3601_s20 + $0x60] sm:$0xff]  ;;  %v1197_v3 = vld [vmem:[%s3601_s20 + $0x58] sm:$0xff]  ;;  %v1196_v5 = vld [vmem:[%s3601_s20 + $0x50] sm:$0xff]  ;;  %v1025_v6 = vand.u32 127, %v1024_v56 }
 0x1bf   : > { %1207 = vmatpush.msra.mxu2 %v1200_v60  ;;  %v994_v4 = vld [vmem:[%s3353_s28 + $0x10] sm:$0xff]  ;;  %v993_v7 = vld [vmem:[%s3353_s28 + $0x8] sm:$0xff]  ;;  %v992_v9 = vld [vmem:[%s3353_s28] sm:$0xff] }
 0x1c0   : > { %v1033_v62 = vadd.s32 40, %v1028_v58  ;;  %1906 = vmatpush.msra.mxu3 %v1200_v60  ;;  %v1195_v8 = vld [vmem:[%s3601_s20 + $0x48] sm:$0xff]  ;;  %v1194_v10 = vld [vmem:[%s3601_s20 + $0x40] sm:$0xff]  ;;  %v988_v11 = vld [vmem:[%s3351_s17] sm:$0xff]  ;;  %vm1060_vm1 = vcmp.lt.s32.totalorder %v1025_v6, 44 }
 0x1c1   : > { %1208 = vmatpush.msra.mxu2 %v1199_v63  ;;  %v990_v12 = vld [vmem:[%s3351_s17 + $0x10] sm:$0xff]  ;;  %v1193_v13 = vld [vmem:[%s3601_s20 + $0x38] sm:$0xff]  ;;  %v1192_v14 = vld [vmem:[%s3601_s20 + $0x30] sm:$0xff] }
 0x1c2   : > { %vm1071_vm0 = vcmp.lt.s32.totalorder %v1033_v62, 44  ;;  %1907 = vmatpush.msra.mxu3 %v1199_v63  ;;  %v1191_v15 = vld [vmem:[%s3601_s20 + $0x28] sm:$0xff]  ;;  %v1190_v16 = vld [vmem:[%s3601_s20 + $0x20] sm:$0xff]  ;;  %v1189_v17 = vld [vmem:[%s3601_s20 + $0x18] sm:$0xff] }
 0x1c3   : > { %1841 = vmatpush.msk.msra.mxu0 %vm1071_vm0, %v997_v61  ;;  %1209 = vmatpush.msra.mxu2 %v1198_v1  ;;  %v1188_v18 = vld [vmem:[%s3601_s20 + $0x10] sm:$0xff]  ;;  %v1187_v19 = vld [vmem:[%s3601_s20 + $0x8] sm:$0xff]  ;;  %v1186_v20 = vld [vmem:[%s3601_s20] sm:$0xff] }
 0x1c4   : > { %1908 = vmatpush.msra.mxu3 %v1198_v1  ;;  %v1130_v23 = vld [vmem:[#allocation2] sm:$0xff]  ;;  %v1131_v29 = vld [vmem:[#allocation2 + $0x8] sm:$0xff]  ;;  %v2459_v45 = vld [vmem:[#allocation3] ss:$0 sm:$0xff] }
 0x1c5   : > { %1143 = vmatpush.msra.mxu0 %v996_v0  ;;  %1210 = vmatpush.msra.mxu2 %v1197_v3  ;;  %v2457_v33 = vld [vmem:[%s3602_s21] ss:$0 sm:$0xff] }
 0x1c6   : > { %1174 = vmatmul.f32.gmra.mxu1 %v2956_v57  ;;  %1909 = vmatpush.msra.mxu3 %v1197_v3  ;;  %v2458_v36 = vld [vmem:[%s3603_s23] ss:$0 sm:$0xff] }
 0x1c7   : > { %1144 = vmatpush.msra.mxu0 %v995_v2  ;;  %1211 = vmatpush.msra.mxu2 %v1196_v5 }
 0x1c8   : > { %1910 = vmatpush.msra.mxu3 %v1196_v5 }
 0x1c9   : > { %1145 = vmatpush.msra.mxu0 %v994_v4  ;;  %1212 = vmatpush.msra.mxu2 %v1195_v8 }
 0x1ca   : > { %1911 = vmatpush.msra.mxu3 %v1195_v8 }
 0x1cb   : > { %1146 = vmatpush.msra.mxu0 %v993_v7  ;;  %1213 = vmatpush.msra.mxu2 %v1194_v10 }
 0x1cc   : > { %1912 = vmatpush.msra.mxu3 %v1194_v10 }
 0x1cd   : > { %1147 = vmatpush.msra.mxu0 %v992_v9  ;;  %1214 = vmatpush.msra.mxu2 %v1193_v13 }
 0x1ce   : > { %1842 = vmatmul.msk.f32.vlgmr.msra.gmra.mxu0 %vm1060_vm1, %v988_v11  ;;  %1913 = vmatpush.msra.mxu3 %v1193_v13 }
 0x1cf   : > { %1215 = vmatpush.msra.mxu2 %v1192_v14 }
 0x1d0   : > { %1914 = vmatpush.msra.mxu3 %v1192_v14 }
 0x1d1   : > { %1216 = vmatpush.msra.mxu2 %v1191_v15 }
 0x1d2   : > { %1915 = vmatpush.msra.mxu3 %v1191_v15 }
 0x1d3   : > { %1217 = vmatpush.msra.mxu2 %v1190_v16 }
 0x1d4   : > { %1916 = vmatpush.msra.mxu3 %v1190_v16 }
 0x1d5   : > { %1218 = vmatpush.msra.mxu2 %v1189_v17 }
 0x1d6   : > { %1843 = vmatmul.msk.f32.gmra.mxu0 %vm1060_vm1, %v990_v12  ;;  %1917 = vmatpush.msra.mxu3 %v1189_v17 }
 0x1d7   : > { %1219 = vmatpush.msra.mxu2 %v1188_v18 }
 0x1d8   : > { %1918 = vmatpush.msra.mxu3 %v1188_v18 }
 0x1d9   : > { %1220 = vmatpush.msra.mxu2 %v1187_v19 }
 0x1da   : > { %1919 = vmatpush.msra.mxu3 %v1187_v19 }
 0x1db   : > { %1221 = vmatpush.msra.mxu2 %v1186_v20 }
 0x1dc   : > { %1920 = vmatpush.msra.mxu3 %v1186_v20 }
 0x23b   : > { %v1172_v21 = vpop.f32.mrf.mxu1 }
 0x243   : > { %v1175_v27 = vpop.f32.mrf.mxu1 }
 0x24b   : > { %v1149_v22 = vpop.f32.mrf.mxu0 }
 0x24c   : > { %v1173_v24 = vadd.f32 %v1172_v21, %v1149_v22 }
 0x24e   : > { %v1178_v25 = vadd.f32 %v1173_v24, %v1130_v23 }
 0x250   : > { %1180 = vst [vmem:[#allocation2] sm:$0xff] %v1178_v25  ;;  %v1184_v26 = vmax.f32 %v1178_v25, 0.0 }
 0x252   : > { %1222 = vmatmul.f32.vlgmr.msra.gmra.mxu2 %v1184_v26 }
 0x253   : > { %v1152_v28 = vpop.f32.mrf.mxu0 }
 0x254   : > { %v1176_v30 = vadd.f32 %v1175_v27, %v1152_v28 }
 0x256   : > { %v1179_v31 = vadd.f32 %v1176_v30, %v1131_v29 }
 0x258   : > { %1181 = vst [vmem:[#allocation2 + $0x8] sm:$0xff] %v1179_v31  ;;  %v1185_v32 = vmax.f32 %v1179_v31, 0.0 }
 0x25a   : > { %1225 = vmatmul.f32.vlgmr.msra.gmra.mxu3 %v1185_v32 }
 0x2d5   : > { %v1223_v34 = vpop.f32.mrf.mxu2 }
 0x2d6   : > { %v1224_v35 = vadd.f32 %v2457_v33, %v1223_v34 }
 0x2d8   : > { %v1229_v37 = vmax.f32 %v1224_v35, 0.0 }
 0x2da   : > { %v1235_v38 = vmul.f32 %v2458_v36, %v1229_v37 }
 0x2dc   : > { %v1238_v39 = vsel %vm1237_vm2, %v1235_v38, 0.0 }
 0x2dd   : > { %1239 = vadd.xlane.f32.xlu0 %v1238_v39  ;;  %v1226_v40 = vpop.f32.mrf.mxu3 }
 0x2de   : > { %v1227_v41 = vadd.f32 %v2457_v33, %v1226_v40 }
 0x2e0   : > { %v1230_v42 = vmax.f32 %v1227_v41, 0.0 }
 0x2e2   : > { %v1236_v43 = vmul.f32 %v2458_v36, %v1230_v42 }
 0x2e4   : > { %v1241_v44 = vsel %vm1237_vm2, %v1236_v43, 0.0 }
 0x2e5   : > { %1242 = vadd.xlane.f32.xlu0 %v1241_v44 }
 0x350   : > { %v1240_v46 = vpop.xlane.xlu0 %1239 }
 0x351   : > { %v1248_v47 = vadd.f32 %v2459_v45, %v1240_v46 }
 0x353   : > { %1251 = vst.msk [vmem:[%s3360_s25] sm:$0xff] %vm1250_vm3, %v1248_v47 }
 0x358   : > { %v1243_v48 = vpop.xlane.xlu0 %1242 }
 0x359   : > { %v1249_v49 = vadd.f32 %v2459_v45, %v1243_v48 }
 0x35b   : > { %1252 = vst.msk [vmem:[%s3360_s25 + $0x8] sm:$0xff] %vm1250_vm3, %v1249_v49 }
 0x35c PF: > { %1259 = sbr.rel (!%p3109_p1) target bundleno = 909 (0x38d), region = 162  ;;  %s3605_s15 = sld [smem:[#allocation15_spill]] (%p3109_p1) }
 0x35d   : > { %s3606_s19 = sld [smem:[#allocation29_spill]] (%p3109_p1) }
 0x362   : > { %s1845_s8 = sshll.u32 %s3605_s15, 1  ;;  %s1870_s12 = sshll.u32 %s3605_s15, 4 }
 0x363   : > { %s1261_s22 = ssub.s32 3, %s1845_s8  ;;  %s3475_s7 = scalar_lea.vmem %s3606_s19, %s1870_s12  }
 0x364   : > { %p1262_p0 = scmp.lt.s32.totalorder %s1261_s22, 2 }
 0x366   : > { %s3654_s22 = smov (!%p1262_p0, %s1261_s22), 2 }
 0x367   : > { %s1846_s17 = sshll.u32 %s3654_s22, 3 }
 0x368   : > { %p1849_p2 = scmp.eq.s32.totalorder %s1846_s17, 0 }
 0x369   : > { %s3481_s27 = sshrl.u32 (!%p1849_p2), %s3654_s22, 1 }
 0x36a   : > { %1270 = sbr.rel (%p1849_p2) target bundleno = 909 (0x38d), region = 166  ;;  %p1850_p1 = scmp.le.s32.totalorder (!%p1849_p2), %s3481_s27, 0 }
 0x36f   : > { %1696 = sbr.rel (%p1850_p1) target bundleno = 892 (0x37c), region = 396  ;;  %s2919_s16 = smov (!%p1850_p1), %s3475_s7  }
 0x370   : > { %s2923_s2 = smov (!%p1850_p1), %s3360_s25   ;;  %s2927_s0 = smov (!%p1850_p1), 0  }
 0x371   : > { %s2931_s9 = smov (!%p1850_p1), 0  }
 0x374 LB: >> { %v1335_v50 = vld [vmem:[%s2925_s2] sm:$0xff]  ;;  %v1337_v51 = vld [vmem:[%s2925_s2 + $0x8] sm:$0xff]  ;;  %s1339_s18 = sadd.s32 1, %s2929_s0  ;;  %s1329_s9 = sadd.s32 1, %s2933_s9   ;;  %s2933_s9 = sphi %s2931_s9, %s1329_s9   ;;  %s2929_s0 = sphi %s2927_s0, %s2928_s0   ;;  %s2925_s2 = sphi %s2923_s2, %s1344_s2   ;;  %s2921_s16 = sphi %s2919_s16, %s1345_s16  }
 0x375   : >> { %1336 = vst [vmem:[%s2921_s16] sm:$0xff] %v1335_v50  ;;  %p1340_p3 = scmp.ge.s32.totalorder %s1339_s18, %s3481_s27  ;;  %p1328_p4 = scmp.ge.s32.totalorder %s1329_s9, %s3481_s27 }
 0x376   : >> { %1338 = vst [vmem:[%s2921_s16 + $0x8] sm:$0xff] %v1337_v51 }
 0x377   : >> { %s3656_s18 = smov (%p1340_p3, %s1339_s18), 0  ;;  %1331 = sbr.rel (!%p1328_p4) target bundleno = 884 (0x374), region = 402 }
 0x378   : >> { %s1851_s3 = sshll.u32 %s3656_s18, 4  ;;  %s2928_s0 = smov %s3656_s18  }
 0x379   : >> { %s1344_s2 = scalar_lea.vmem %s3360_s25, %s1851_s3 [#allocation7]   ;;  %s1345_s16 = scalar_lea.vmem %s3475_s7, %s1851_s3  }
 0x37c PF: > { %s3491_s4 = sand.u32 1, %s3654_s22   ;;  %s1871_s5 = sshll.u32 %s3481_s27, 4 }
 0x37d   : > { %s1350_s26 = scalar_lea.vmem %s3360_s25, %s1871_s5 [#allocation7]   ;;  %s1352_s29 = scalar_lea.vmem %s3475_s7, %s1871_s5  }
 0x37e   : > { %p1856_p5 = scmp.le.s32.totalorder %s3491_s4, 0 }
 0x37f   : > { %s2935_s21 = smov (!%p1856_p5), %s1352_s29   ;;  %s2939_s6 = smov (!%p1856_p5), %s1350_s26  }
 0x380   : > { %1710 = sbr.rel (%p1856_p5) target bundleno = 909 (0x38d), region = 407  ;;  %s2943_s10 = smov (!%p1856_p5), 0  }
 0x381   : > { %s2947_s23 = smov (!%p1856_p5), 0  }
 0x385 LB: >> { %v1362_v52 = vld [vmem:[%s2941_s6] sm:$0xff]  ;;  %s1364_s24 = sadd.s32 1, %s2945_s10  ;;  %s1356_s23 = sadd.s32 1, %s2949_s23   ;;  %s2949_s23 = sphi %s2947_s23, %s1356_s23   ;;  %s2945_s10 = sphi %s2943_s10, %s2944_s10   ;;  %s2941_s6 = sphi %s2939_s6, %s1369_s6   ;;  %s2937_s21 = sphi %s2935_s21, %s1370_s21  }
 0x386   : >> { %1363 = vst [vmem:[%s2937_s21] sm:$0xff] %v1362_v52  ;;  %p1365_p6 = scmp.ge.s32.totalorder %s1364_s24, %s3491_s4  ;;  %p1355_p7 = scmp.ge.s32.totalorder %s1356_s23, %s3491_s4 }
 0x388   : >> { %s3658_s24 = smov (%p1365_p6, %s1364_s24), 0  ;;  %1358 = sbr.rel (!%p1355_p7) target bundleno = 901 (0x385), region = 413 }
 0x389   : >> { %s1857_s25 = sshll.u32 %s3658_s24, 3  ;;  %s2944_s10 = smov %s3658_s24  }
 0x38a   : >> { %s1369_s6 = scalar_lea.vmem %s1350_s26, %s1857_s25 [#allocation7]   ;;  %s1370_s21 = scalar_lea.vmem %s1352_s29, %s1857_s25  }
 0x38d PF: > { %s22_s13 = sadd.s32 1, %s2813_s13   ;;  %s3607_s26 = sld [smem:[#allocation10_spill]] }
 0x38e   : > { %p19_p8 = scmp.ge.s32.totalorder %s22_s13, 6   ;;  %s3608_s27 = sld [smem:[#allocation22_spill]] }
 0x38f   : > { %s3609_s28 = sld [smem:[#allocation11_spill]]  ;;  %s3616_s29 = smov %s2785_s30 }
 0x390   : > { %s3610_s15 = sld [smem:[#allocation19_spill]]  ;;  %s3618_s10 = smov %s2805_s11 }
 0x391   : > { %s3611_s8 = sld [smem:[#allocation13_spill]] }
 0x392   : > { %s3612_s9 = sld [smem:[#allocation20_spill]] }
 0x393   : > { %s3613_s6 = sld [smem:[#allocation16_spill]] }
 0x394   : > { %s3614_s12 = sld [smem:[#allocation17_spill]] }
 0x395   : > { %s3615_s22 = sld [smem:[#allocation18_spill]] }
 0x396   : > { %s3617_s30 = smov %s3610_s15 }
 0x397   :  { %21 = sbr.rel (!%p19_p8) target bundleno = 14 (0xe), region = 424 }
 0x39a   : > { %s3619_s11 = smov %s3614_s12 }
 0x39b   : > { %s3620_s12 = smov %s3615_s22 }
 0x39c   :  { %1386 = vsyncpa [#allocation6], 1 }
 0x39d   :  { %1388 = vsyncpa [#allocation6 + $0x1], 1 }

</bundles_post_ra>
